<compile_context>
chip_gen: v6e
topology: v6e:2x2x1
jax: 0.10.0
libtpu: 0.0.40
codegen_flags: <defaults>
</compile_context>

<pallas_src>
import math

import jax
import jax.numpy as jnp
from jax import lax
from jax.experimental import pallas as pl
from jax.experimental.pallas import tpu as pltpu
from jax.scipy.special import erf

INV_SQRT2 = 1.0 / math.sqrt(2.0)
SMOOTH_CEIL_THR = 0.5
FLOP_TILE = 512  # flop-axis (reduction) tile; multiple of 256 keeps the MXU fed


def _shift_rows(a, s):
    """Row-shifted copy: result[i, :] = a[i + s, :], zero-filled at the edges."""
    n = a.shape[0]
    if s == 0:
        return a
    z = jnp.zeros((abs(s),) + a.shape[1:], a.dtype)
    if s > 0:
        return jnp.concatenate([a[s:, :], z], axis=0)
    return jnp.concatenate([z, a[: n + s, :]], axis=0)


def _shift_cols(a, s):
    """Column-shifted copy: result[:, j] = a[:, j + s], zero-filled at the edges."""
    n = a.shape[1]
    if s == 0:
        return a
    z = jnp.zeros(a.shape[:1] + (abs(s),), a.dtype)
    if s > 0:
        return jnp.concatenate([a[:, s:], z], axis=1)
    return jnp.concatenate([z, a[:, : n + s]], axis=1)


# --------------------------- fused Pallas kernel -----------------------------
def _ff_compat_kernel(num_bins_ck, num_bins_ce, num_bins_y, ext_bin,
                      slice_capacity, bin_area):
    num_ck_ce = num_bins_ck * num_bins_ce
    ff_per_ce_grp = float(slice_capacity) / float(num_ck_ce)
    inv_thr = 1.0 / SMOOTH_CEIL_THR
    area_scale = float(slice_capacity) * float(bin_area)

    def smooth_ceil(v):
        f = jnp.floor(v)
        return f + jnp.minimum((v - f) * inv_thr, 1.0)

    def kernel(dxt_ref, w_ref, out_ref, acc_ref):
        # ---- accumulate demand map over flop tiles (single fused MXU pass) ----
        @pl.when(pl.program_id(0) == 0)
        def _init():
            acc_ref[...] = jnp.zeros_like(acc_ref)

        # (NX, TF)bf16 @ (TF, C*NY)bf16 -> (NX, C*NY)f32.  dem_x is pre-transposed
        # (no implicit XLU transpose) and all channels are fused into one lane-dense
        # RHS, so there is one big matmul instead of C tiny ones.
        acc_ref[...] += jnp.dot(dxt_ref[...], w_ref[...],
                                preferred_element_type=jnp.float32)

        # ---- finalize on the last flop tile (keeps dem_map in VMEM, no 2nd kernel) ----
        @pl.when(pl.program_id(0) == pl.num_programs(0) - 1)
        def _finalize():
            d = acc_ref[...]                           # (NX, C*NY) f32
            nx = d.shape[0]
            ny = num_bins_y

            # +/-ext_bin box filter over x (rows): shift-adds, not an (NX,NX) matmul.
            aggx = d
            for s in range(1, ext_bin + 1):
                aggx = aggx + _shift_rows(d, s) + _shift_rows(d, -s)

            # +/-ext_bin box filter over y, lane-dense over the packed (NX, C*NY) slab;
            # a channel-boundary mask keeps demand from bleeding between channels.
            col_in_ch = lax.broadcasted_iota(jnp.int32, d.shape, 1) % ny
            agg = aggx
            for s in range(1, ext_bin + 1):
                plus = jnp.where(col_in_ch < ny - s, _shift_cols(aggx, s), 0.0)
                minus = jnp.where(col_in_ch >= s, _shift_cols(aggx, -s), 0.0)
                agg = agg + plus + minus

            # hierarchical smooth-ceil FF -> slice-count model (all f32 on the VPU).
            total = jnp.zeros((nx, ny), jnp.float32)
            halves = jnp.zeros((nx, ny), jnp.float32)
            for ck in range(num_bins_ck):
                q = jnp.zeros((nx, ny), jnp.float32)
                for ce in range(num_bins_ce):
                    c = ck * num_bins_ce + ce
                    dc = agg[:, c * ny:(c + 1) * ny]
                    total = total + dc
                    q = q + smooth_ceil(dc * (1.0 / ff_per_ce_grp))
                halves = halves + smooth_ceil(q * (1.0 / num_bins_ce))
            slices = smooth_ceil(halves * (1.0 / num_bins_ck))

            inv_total = pl.reciprocal(jnp.maximum(total, 1e-6), approx=True)
            out_ref[...] = jnp.where(total > 1e-6,
                                     slices * area_scale * inv_total,
                                     0.0)

    return kernel


def ff_area_map(dxt, w_all, num_bins_x, num_bins_y, num_bins_ck, num_bins_ce,
                ext_bin, slice_capacity, bin_area):
    num_ck_ce = num_bins_ck * num_bins_ce
    cny = num_ck_ce * num_bins_y
    f_pad = dxt.shape[1]
    grid = (f_pad // FLOP_TILE,)
    return pl.pallas_call(
        _ff_compat_kernel(num_bins_ck, num_bins_ce, num_bins_y, ext_bin,
                          slice_capacity, bin_area),
        out_shape=jax.ShapeDtypeStruct((num_bins_x, num_bins_y), jnp.float32),
        grid=grid,
        in_specs=[
            pl.BlockSpec((num_bins_x, FLOP_TILE), lambda i: (0, i)),   # dem_x^T tile
            pl.BlockSpec((FLOP_TILE, cny), lambda i: (i, 0)),          # fused dem_y*onehot
        ],
        out_specs=pl.BlockSpec((num_bins_x, num_bins_y), lambda i: (0, 0)),
        scratch_shapes=[pltpu.VMEM((num_bins_x, cny), jnp.float32)],   # resident dem_map
        compiler_params=pltpu.CompilerParams(dimension_semantics=("arbitrary",)),
    )(dxt, w_all)


# --------------------------------- Module -----------------------------------
class FFCompatibility:
    def __init__(self, flop_indices, flop_ctrlSets, node_size_x, node_size_y,
                 num_bins_x, num_bins_y, num_bins_ck, num_bins_ce,
                 xl, yl, xh, yh,
                 inst_stddev_x, inst_stddev_y, inst_stddev_trunc,
                 slice_capacity, sliceFF_ctrl_mode):
        self.flop_indices = flop_indices.astype(jnp.int32)
        self.flop_ctrlSets = flop_ctrlSets.astype(jnp.int32)   # (F, 3): [_, cksr, ce]
        self.node_size_x = node_size_x
        self.node_size_y = node_size_y
        self.num_bins_x = int(num_bins_x)
        self.num_bins_y = int(num_bins_y)
        self.num_bins_ck = int(num_bins_ck)
        self.num_bins_ce = int(num_bins_ce)
        self.xl, self.yl, self.xh, self.yh = float(xl), float(yl), float(xh), float(yh)
        self.inst_stddev_x = float(inst_stddev_x)
        self.inst_stddev_y = float(inst_stddev_y)
        self.inst_stddev_trunc = float(inst_stddev_trunc)
        self.SLICE_CAPACITY = int(slice_capacity)
        self.half_ctrl_mode = 1 if sliceFF_ctrl_mode == 'HALF' else 0

    def _truncated_gaussian_demand(self, center, origin, stddev, bin_idx, ext_bin, num_bins):
        lo = origin + jnp.arange(num_bins, dtype=jnp.float32) * stddev
        hi = lo + stddev
        z_hi = (hi[None, :] - center[:, None]) * (INV_SQRT2 / stddev)
        z_lo = (lo[None, :] - center[:, None]) * (INV_SQRT2 / stddev)
        raw = 0.5 * (erf(z_hi) - erf(z_lo))
        b = jnp.arange(num_bins, dtype=jnp.int32)[None, :]
        mask = (b >= (bin_idx[:, None] - ext_bin)) & (b <= (bin_idx[:, None] + ext_bin))
        dem = raw * mask.astype(raw.dtype)
        # normalize so each instance contributes total demand 1 within its truncated window
        dem = dem / jnp.maximum(dem.sum(axis=1, keepdims=True), 1e-12)
        return dem

    def __call__(self, pos):
        n = self.node_size_x.shape[0]
        dtype = pos.dtype

        if self.half_ctrl_mode == 0 and self.num_bins_ck == 1:
            # trivial branch of the PyTorch forward (no extension call)
            areas = self.node_size_x * self.node_size_y
            res = jnp.zeros((n,), dtype)
            return res.at[self.flop_indices].set(areas[self.flop_indices].astype(dtype))

        pos_x = pos[:n]
        pos_y = pos[n:]
        ext_bin = max(int(round(self.inst_stddev_trunc - 0.5)), 0)

        idx = self.flop_indices
        f = int(idx.shape[0])
        xc = pos_x[idx] + 0.5 * self.node_size_x[idx]
        yc = pos_y[idx] + 0.5 * self.node_size_y[idx]
        bin_x = jnp.clip(jnp.floor((xc - self.xl) / self.inst_stddev_x).astype(jnp.int32),
                         0, self.num_bins_x - 1)
        bin_y = jnp.clip(jnp.floor((yc - self.yl) / self.inst_stddev_y).astype(jnp.int32),
                         0, self.num_bins_y - 1)

        dem_x = self._truncated_gaussian_demand(
            xc, self.xl, self.inst_stddev_x, bin_x, ext_bin, self.num_bins_x).astype(jnp.float32)
        dem_y = self._truncated_gaussian_demand(
            yc, self.yl, self.inst_stddev_y, bin_y, ext_bin, self.num_bins_y).astype(jnp.float32)

        num_ck_ce = self.num_bins_ck * self.num_bins_ce
        ck = self.flop_ctrlSets[:, 1] % self.num_bins_ck
        ce = self.flop_ctrlSets[:, 2] % self.num_bins_ce
        one_hot = jax.nn.one_hot(ck * self.num_bins_ce + ce, num_ck_ce, dtype=jnp.float32)

        # Fused, lane-dense MXU operands: dem_x pre-transposed, channels folded into the
        # RHS last dim.  bf16 inputs (native MXU dtype), f32 accumulation in the kernel.
        dxt = dem_x.T.astype(jnp.bfloat16)                                   # (NX, F)
        w_all = (dem_y[:, None, :] * one_hot[:, :, None]).reshape(
            f, num_ck_ce * self.num_bins_y).astype(jnp.bfloat16)             # (F, C*NY)

        # pad the flop axis to a multiple of the kernel tile; zero rows contribute nothing
        f_pad = ((f + FLOP_TILE - 1) // FLOP_TILE) * FLOP_TILE
        pad = f_pad - f
        dxt = jnp.pad(dxt, ((0, 0), (0, pad)))
        w_all = jnp.pad(w_all, ((0, pad), (0, 0)))

        bin_area = self.inst_stddev_x * self.inst_stddev_y
        area_map = ff_area_map(dxt, w_all,
                               self.num_bins_x, self.num_bins_y,
                               self.num_bins_ck, self.num_bins_ce,
                               ext_bin, self.SLICE_CAPACITY, bin_area)

        # per-flop gather + scatter into resource_areas (data-dependent indexing: glue JAX)
        per_flop_area = area_map[bin_x, bin_y]
        resource_areas = jnp.zeros((n,), dtype).at[idx].set(per_flop_area.astype(dtype))
        resource_areas = resource_areas / self.SLICE_CAPACITY
        return resource_areas


# ----------------------------------- main ------------------------------------
if __name__ == "__main__":
    key = jax.random.PRNGKey(0)
    k1, k2, k3, k4 = jax.random.split(key, 4)

    num_nodes = 96
    num_flops = 64
    num_bins_x = num_bins_y = 16
    num_bins_ck, num_bins_ce = 2, 2
    slice_capacity = 16

    node_size_x = jnp.ones((num_nodes,), jnp.float32)
    node_size_y = jnp.full((num_nodes,), 1.0 / slice_capacity, jnp.float32)
    flop_indices = jnp.arange(num_flops, dtype=jnp.int32)
    cksr = jax.random.randint(k3, (num_flops,), 0, 5, dtype=jnp.int32)
    ce = jax.random.randint(k4, (num_flops,), 0, 7, dtype=jnp.int32)
    flop_ctrlSets = jnp.stack([jnp.arange(num_flops, dtype=jnp.int32), cksr, ce], axis=1)

    pos_x = jax.random.uniform(k1, (num_nodes,), minval=0.5, maxval=14.5)
    pos_y = jax.random.uniform(k2, (num_nodes,), minval=0.5, maxval=14.5)
    pos = jnp.concatenate([pos_x, pos_y]).astype(jnp.float32)

    module = FFCompatibility(
        flop_indices=flop_indices, flop_ctrlSets=flop_ctrlSets,
        node_size_x=node_size_x, node_size_y=node_size_y,
        num_bins_x=num_bins_x, num_bins_y=num_bins_y,
        num_bins_ck=num_bins_ck, num_bins_ce=num_bins_ce,
        xl=0.0, yl=0.0, xh=16.0, yh=16.0,
        inst_stddev_x=1.0, inst_stddev_y=1.0, inst_stddev_trunc=1.5,
        slice_capacity=slice_capacity, sliceFF_ctrl_mode='HALF')

    out = module(pos)
    out = jax.block_until_ready(out)
    assert out.shape == (num_nodes,)
    assert bool(jnp.all(jnp.isfinite(out)))
    assert bool(jnp.all(out >= 0.0))
    print("KERNEL_OK")
</pallas_src>

<mosaic_0001>
module attributes {stable_mosaic.version = 11 : i64} {
  func.func @kernel(%arg0: i32, %arg1: memref<16x512xbf16, #tpu.memory_space<vmem>>, %arg2: memref<512x64xbf16, #tpu.memory_space<vmem>>, %arg3: memref<16x16xf32, #tpu.memory_space<vmem>>, %arg4: memref<16x64xf32, #tpu.memory_space<vmem>>) attributes {dimension_semantics = [#tpu.dimension_semantics<arbitrary>], iteration_bounds = array<i64: 1>, scalar_prefetch = 0 : i64, scratch_operands = 1 : i64, tpu.core_type = #tpu.core_type<tc>, window_params = [{transform_indices = @transform_0, window_bounds = array<i64: 16, 512>}, {transform_indices = @transform_1, window_bounds = array<i64: 512, 64>}, {pipeline_mode = #tpu.pipeline_mode<synchronous>, transform_indices = @transform_2, window_bounds = array<i64: 16, 16>}]} {
    %c0_i32 = arith.constant 0 : i32
    %0 = arith.cmpi eq, %arg0, %c0_i32 : i32
    %1 = arith.extui %0 : i1 to i32
    %c0_i32_0 = arith.constant 0 : i32
    %2 = arith.cmpi ne, %1, %c0_i32_0 : i32
    scf.if %2 {
      %cst_10 = arith.constant 0.000000e+00 : f32
      %12 = vector.broadcast %cst_10 : f32 to vector<16x64xf32>
      %c0_11 = arith.constant 0 : index
      %c0_12 = arith.constant 0 : index
      %13 = vector.load %arg4[%c0_11, %c0_12] : memref<16x64xf32, #tpu.memory_space<vmem>>, vector<16x64xf32>
      tpu.vector_store %arg4[%c0_11, %c0_12], %12 {strides = array<i32>} : memref<16x64xf32, #tpu.memory_space<vmem>>, vector<16x64xf32>,
    } else {
    }
    %c0 = arith.constant 0 : index
    %c0_1 = arith.constant 0 : index
    %3 = vector.load %arg4[%c0, %c0_1] : memref<16x64xf32, #tpu.memory_space<vmem>>, vector<16x64xf32>
    %c0_2 = arith.constant 0 : index
    %c0_3 = arith.constant 0 : index
    %4 = vector.load %arg1[%c0_2, %c0_3] : memref<16x512xbf16, #tpu.memory_space<vmem>>, vector<16x512xbf16>
    %c0_4 = arith.constant 0 : index
    %c0_5 = arith.constant 0 : index
    %5 = vector.load %arg2[%c0_4, %c0_5] : memref<512x64xbf16, #tpu.memory_space<vmem>>, vector<512x64xbf16>
    %cst = arith.constant dense<0.000000e+00> : vector<16x64xf32>
    %6 = tpu.matmul %4, %5, %cst {dimension_numbers = #tpu.dot_dimension_numbers<[1], [0], [0], [1], [0, 0, 1, 1], [], []>} : vector<16x512xbf16>, vector<512x64xbf16>, vector<16x64xf32> -> vector<16x64xf32>
    %7 = arith.addf %3, %6 : vector<16x64xf32>
    %c0_6 = arith.constant 0 : index
    %c0_7 = arith.constant 0 : index
    %8 = vector.load %arg4[%c0_6, %c0_7] : memref<16x64xf32, #tpu.memory_space<vmem>>, vector<16x64xf32>
    tpu.vector_store %arg4[%c0_6, %c0_7], %7 {strides = array<i32>} : memref<16x64xf32, #tpu.memory_space<vmem>>, vector<16x64xf32>,
    %c0_i32_8 = arith.constant 0 : i32
    %9 = arith.cmpi eq, %arg0, %c0_i32_8 : i32
    %10 = arith.extui %9 : i1 to i32
    %c0_i32_9 = arith.constant 0 : i32
    %11 = arith.cmpi ne, %10, %c0_i32_9 : i32
    scf.if %11 {
      %c0_10 = arith.constant 0 : index
      %c0_11 = arith.constant 0 : index
      %12 = vector.load %arg4[%c0_10, %c0_11] : memref<16x64xf32, #tpu.memory_space<vmem>>, vector<16x64xf32>
      %cst_12 = arith.constant 0.000000e+00 : f32
      %13 = vector.broadcast %cst_12 : f32 to vector<1x64xf32>
      %14 = vector.extract_strided_slice %12 {offsets = [1, 0], sizes = [15, 64], strides = [1, 1]} : vector<16x64xf32> to vector<15x64xf32>
      %15 = tpu.concatenate %14, %13 in 0 : vector<15x64xf32>, vector<1x64xf32> -> vector<16x64xf32>
      %16 = arith.addf %12, %15 : vector<16x64xf32>
      %cst_13 = arith.constant 0.000000e+00 : f32
      %17 = vector.broadcast %cst_13 : f32 to vector<1x64xf32>
      %18 = vector.extract_strided_slice %12 {offsets = [0, 0], sizes = [15, 64], strides = [1, 1]} : vector<16x64xf32> to vector<15x64xf32>
      %19 = tpu.concatenate %17, %18 in 0 : vector<1x64xf32>, vector<15x64xf32> -> vector<16x64xf32>
      %20 = arith.addf %16, %19 : vector<16x64xf32>
      %21 = tpu.iota {dimensions = array<i32: 1>} : vector<16x64xi32>
      %c16_i32 = arith.constant 16 : i32
      %c0_i32_14 = arith.constant 0 : i32
      %22 = arith.cmpi eq, %c16_i32, %c0_i32_14 : i32
      %c1_i32 = arith.constant 1 : i32
      %23 = arith.select %22, %c1_i32, %c16_i32 : i32
      %24 = vector.broadcast %23 : i32 to vector<16x64xi32>
      %25 = arith.remsi %21, %24 : vector<16x64xi32>
      %c0_i32_15 = arith.constant 0 : i32
      %26 = vector.broadcast %c0_i32_15 : i32 to vector<16x64xi32>
      %27 = arith.cmpi ne, %25, %26 : vector<16x64xi32>
      %c0_i32_16 = arith.constant 0 : i32
      %28 = vector.broadcast %c0_i32_16 : i32 to vector<16x64xi32>
      %29 = arith.cmpi slt, %25, %28 : vector<16x64xi32>
      %c0_i32_17 = arith.constant 0 : i32
      %30 = arith.cmpi slt, %23, %c0_i32_17 : i32
      %31 = vector.broadcast %30 : i1 to vector<16x64xi1>
      %32 = vector.broadcast %31 : vector<16x64xi1> to vector<16x64xi1>
      %33 = arith.xori %29, %32 : vector<16x64xi1>
      %34 = arith.andi %33, %27 : vector<16x64xi1>
      %35 = vector.broadcast %23 : i32 to vector<16x64xi32>
      %36 = arith.addi %25, %35 : vector<16x64xi32>
      %37 = arith.select %34, %36, %25 : vector<16x64xi1>, vector<16x64xi32>
      %c15_i32 = arith.constant 15 : i32
      %38 = vector.broadcast %c15_i32 : i32 to vector<16x64xi32>
      %39 = arith.cmpi slt, %37, %38 : vector<16x64xi32>
      %cst_18 = arith.constant 0.000000e+00 : f32
      %40 = vector.broadcast %cst_18 : f32 to vector<16x1xf32>
      %41 = vector.extract_strided_slice %20 {offsets = [0, 1], sizes = [16, 63], strides = [1, 1]} : vector<16x64xf32> to vector<16x63xf32>
      %42 = tpu.concatenate %41, %40 in 1 : vector<16x63xf32>, vector<16x1xf32> -> vector<16x64xf32>
      %cst_19 = arith.constant 0.000000e+00 : f32
      %43 = vector.broadcast %cst_19 : f32 to vector<16x64xf32>
      %44 = arith.select %39, %42, %43 : vector<16x64xi1>, vector<16x64xf32>
      %c1_i32_20 = arith.constant 1 : i32
      %45 = vector.broadcast %c1_i32_20 : i32 to vector<16x64xi32>
      %46 = arith.cmpi sge, %37, %45 : vector<16x64xi32>
      %cst_21 = arith.constant 0.000000e+00 : f32
      %47 = vector.broadcast %cst_21 : f32 to vector<16x1xf32>
      %48 = vector.extract_strided_slice %20 {offsets = [0, 0], sizes = [16, 63], strides = [1, 1]} : vector<16x64xf32> to vector<16x63xf32>
      %49 = tpu.concatenate %47, %48 in 1 : vector<16x1xf32>, vector<16x63xf32> -> vector<16x64xf32>
      %cst_22 = arith.constant 0.000000e+00 : f32
      %50 = vector.broadcast %cst_22 : f32 to vector<16x64xf32>
      %51 = arith.select %46, %49, %50 : vector<16x64xi1>, vector<16x64xf32>
      %52 = arith.addf %20, %44 : vector<16x64xf32>
      %53 = arith.addf %52, %51 : vector<16x64xf32>
      %cst_23 = arith.constant 0.000000e+00 : f32
      %54 = vector.broadcast %cst_23 : f32 to vector<16x16xf32>
      %cst_24 = arith.constant 0.000000e+00 : f32
      %55 = vector.broadcast %cst_24 : f32 to vector<16x16xf32>
      %cst_25 = arith.constant 0.000000e+00 : f32
      %56 = vector.broadcast %cst_25 : f32 to vector<16x16xf32>
      %57 = vector.extract_strided_slice %53 {offsets = [0, 0], sizes = [16, 16], strides = [1, 1]} : vector<16x64xf32> to vector<16x16xf32>
      %58 = arith.addf %54, %57 : vector<16x16xf32>
      %cst_26 = arith.constant 2.500000e-01 : f32
      %59 = vector.broadcast %cst_26 : f32 to vector<16x16xf32>
      %60 = arith.mulf %57, %59 : vector<16x16xf32>
      %61 = math.floor %60 : vector<16x16xf32>
      %62 = arith.subf %60, %61 : vector<16x16xf32>
      %cst_27 = arith.constant 2.000000e+00 : f32
      %63 = vector.broadcast %cst_27 : f32 to vector<16x16xf32>
      %64 = arith.mulf %62, %63 : vector<16x16xf32>
      %cst_28 = arith.constant 1.000000e+00 : f32
      %65 = vector.broadcast %cst_28 : f32 to vector<16x16xf32>
      %66 = arith.minimumf %64, %65 : vector<16x16xf32>
      %67 = arith.addf %61, %66 : vector<16x16xf32>
      %68 = arith.addf %56, %67 : vector<16x16xf32>
      %69 = vector.extract_strided_slice %53 {offsets = [0, 16], sizes = [16, 16], strides = [1, 1]} : vector<16x64xf32> to vector<16x16xf32>
      %70 = arith.addf %58, %69 : vector<16x16xf32>
      %cst_29 = arith.constant 2.500000e-01 : f32
      %71 = vector.broadcast %cst_29 : f32 to vector<16x16xf32>
      %72 = arith.mulf %69, %71 : vector<16x16xf32>
      %73 = math.floor %72 : vector<16x16xf32>
      %74 = arith.subf %72, %73 : vector<16x16xf32>
      %cst_30 = arith.constant 2.000000e+00 : f32
      %75 = vector.broadcast %cst_30 : f32 to vector<16x16xf32>
      %76 = arith.mulf %74, %75 : vector<16x16xf32>
      %cst_31 = arith.constant 1.000000e+00 : f32
      %77 = vector.broadcast %cst_31 : f32 to vector<16x16xf32>
      %78 = arith.minimumf %76, %77 : vector<16x16xf32>
      %79 = arith.addf %73, %78 : vector<16x16xf32>
      %80 = arith.addf %68, %79 : vector<16x16xf32>
      %cst_32 = arith.constant 5.000000e-01 : f32
      %81 = vector.broadcast %cst_32 : f32 to vector<16x16xf32>
      %82 = arith.mulf %80, %81 : vector<16x16xf32>
      %83 = math.floor %82 : vector<16x16xf32>
      %84 = arith.subf %82, %83 : vector<16x16xf32>
      %cst_33 = arith.constant 2.000000e+00 : f32
      %85 = vector.broadcast %cst_33 : f32 to vector<16x16xf32>
      %86 = arith.mulf %84, %85 : vector<16x16xf32>
      %cst_34 = arith.constant 1.000000e+00 : f32
      %87 = vector.broadcast %cst_34 : f32 to vector<16x16xf32>
      %88 = arith.minimumf %86, %87 : vector<16x16xf32>
      %89 = arith.addf %83, %88 : vector<16x16xf32>
      %90 = arith.addf %55, %89 : vector<16x16xf32>
      %cst_35 = arith.constant 0.000000e+00 : f32
      %91 = vector.broadcast %cst_35 : f32 to vector<16x16xf32>
      %92 = vector.extract_strided_slice %53 {offsets = [0, 32], sizes = [16, 16], strides = [1, 1]} : vector<16x64xf32> to vector<16x16xf32>
      %93 = arith.addf %70, %92 : vector<16x16xf32>
      %cst_36 = arith.constant 2.500000e-01 : f32
      %94 = vector.broadcast %cst_36 : f32 to vector<16x16xf32>
      %95 = arith.mulf %92, %94 : vector<16x16xf32>
      %96 = math.floor %95 : vector<16x16xf32>
      %97 = arith.subf %95, %96 : vector<16x16xf32>
      %cst_37 = arith.constant 2.000000e+00 : f32
      %98 = vector.broadcast %cst_37 : f32 to vector<16x16xf32>
      %99 = arith.mulf %97, %98 : vector<16x16xf32>
      %cst_38 = arith.constant 1.000000e+00 : f32
      %100 = vector.broadcast %cst_38 : f32 to vector<16x16xf32>
      %101 = arith.minimumf %99, %100 : vector<16x16xf32>
      %102 = arith.addf %96, %101 : vector<16x16xf32>
      %103 = arith.addf %91, %102 : vector<16x16xf32>
      %104 = vector.extract_strided_slice %53 {offsets = [0, 48], sizes = [16, 16], strides = [1, 1]} : vector<16x64xf32> to vector<16x16xf32>
      %105 = arith.addf %93, %104 : vector<16x16xf32>
      %cst_39 = arith.constant 2.500000e-01 : f32
      %106 = vector.broadcast %cst_39 : f32 to vector<16x16xf32>
      %107 = arith.mulf %104, %106 : vector<16x16xf32>
      %108 = math.floor %107 : vector<16x16xf32>
      %109 = arith.subf %107, %108 : vector<16x16xf32>
      %cst_40 = arith.constant 2.000000e+00 : f32
      %110 = vector.broadcast %cst_40 : f32 to vector<16x16xf32>
      %111 = arith.mulf %109, %110 : vector<16x16xf32>
      %cst_41 = arith.constant 1.000000e+00 : f32
      %112 = vector.broadcast %cst_41 : f32 to vector<16x16xf32>
      %113 = arith.minimumf %111, %112 : vector<16x16xf32>
      %114 = arith.addf %108, %113 : vector<16x16xf32>
      %115 = arith.addf %103, %114 : vector<16x16xf32>
      %cst_42 = arith.constant 5.000000e-01 : f32
      %116 = vector.broadcast %cst_42 : f32 to vector<16x16xf32>
      %117 = arith.mulf %115, %116 : vector<16x16xf32>
      %118 = math.floor %117 : vector<16x16xf32>
      %119 = arith.subf %117, %118 : vector<16x16xf32>
      %cst_43 = arith.constant 2.000000e+00 : f32
      %120 = vector.broadcast %cst_43 : f32 to vector<16x16xf32>
      %121 = arith.mulf %119, %120 : vector<16x16xf32>
      %cst_44 = arith.constant 1.000000e+00 : f32
      %122 = vector.broadcast %cst_44 : f32 to vector<16x16xf32>
      %123 = arith.minimumf %121, %122 : vector<16x16xf32>
      %124 = arith.addf %118, %123 : vector<16x16xf32>
      %125 = arith.addf %90, %124 : vector<16x16xf32>
      %cst_45 = arith.constant 5.000000e-01 : f32
      %126 = vector.broadcast %cst_45 : f32 to vector<16x16xf32>
      %127 = arith.mulf %125, %126 : vector<16x16xf32>
      %128 = math.floor %127 : vector<16x16xf32>
      %129 = arith.subf %127, %128 : vector<16x16xf32>
      %cst_46 = arith.constant 2.000000e+00 : f32
      %130 = vector.broadcast %cst_46 : f32 to vector<16x16xf32>
      %131 = arith.mulf %129, %130 : vector<16x16xf32>
      %cst_47 = arith.constant 1.000000e+00 : f32
      %132 = vector.broadcast %cst_47 : f32 to vector<16x16xf32>
      %133 = arith.minimumf %131, %132 : vector<16x16xf32>
      %134 = arith.addf %128, %133 : vector<16x16xf32>
      %cst_48 = arith.constant 9.99999997E-7 : f32
      %135 = vector.broadcast %cst_48 : f32 to vector<16x16xf32>
      %136 = arith.maximumf %105, %135 : vector<16x16xf32>
      %137 = tpu.reciprocal %136 {approx = true} : vector<16x16xf32> -> vector<16x16xf32>
      %cst_49 = arith.constant 9.99999997E-7 : f32
      %138 = vector.broadcast %cst_49 : f32 to vector<16x16xf32>
      %139 = arith.cmpf ogt, %105, %138 : vector<16x16xf32>
      %cst_50 = arith.constant 1.600000e+01 : f32
      %140 = vector.broadcast %cst_50 : f32 to vector<16x16xf32>
      %141 = arith.mulf %134, %140 : vector<16x16xf32>
      %142 = arith.mulf %141, %137 : vector<16x16xf32>
      %cst_51 = arith.constant 0.000000e+00 : f32
      %143 = vector.broadcast %cst_51 : f32 to vector<16x16xf32>
      %144 = arith.select %139, %142, %143 : vector<16x16xi1>, vector<16x16xf32>
      %c0_52 = arith.constant 0 : index
      %c0_53 = arith.constant 0 : index
      %145 = vector.load %arg3[%c0_52, %c0_53] : memref<16x16xf32, #tpu.memory_space<vmem>>, vector<16x16xf32>
      tpu.vector_store %arg3[%c0_52, %c0_53], %144 {strides = array<i32>} : memref<16x16xf32, #tpu.memory_space<vmem>>, vector<16x16xf32>,
    } else {
    }
    return
  }
  func.func @transform_0(%arg0: i32) -> (i32, i32) {
    %c0_i32 = arith.constant 0 : i32
    %c0_i32_0 = arith.constant 0 : i32
    return %c0_i32, %arg0 : i32, i32
  }
  func.func @transform_1(%arg0: i32) -> (i32, i32) {
    %c0_i32 = arith.constant 0 : i32
    %c0_i32_0 = arith.constant 0 : i32
    return %arg0, %c0_i32 : i32, i32
  }
  func.func @transform_2(%arg0: i32) -> (i32, i32) {
    %c0_i32 = arith.constant 0 : i32
    %c0_i32_0 = arith.constant 0 : i32
    %c0_i32_1 = arith.constant 0 : i32
    return %c0_i32, %c0_i32_0 : i32, i32
  }
}

</mosaic_0001>

<bundles_post_ra>
// kernel: tpu_custom_call.1
= control target key start
LH: loop header
LB: loop body
LE: loop exit
PB: predicated region body
PF: predicated region fallthrough
CT: control target
= control target key end

     0   :  { %s869_s0 = inlined_call_operand.vmem [shape: bf16[16,512], index: 0, kind: input, shape index: {}]   ;;  %s870_s1 = inlined_call_operand.vmem [shape: bf16[512,64], index: 1, kind: input, shape index: {}]   ;;  %s871_s2 = inlined_call_operand.hbm [shape: f32[16,16], index: 2, kind: output, shape index: {}]  }
   0x1   :  { %v666_v0 = vld [vmem:[%s870_s1 + $0x78] sm:$0xff]   ;;  %v670_v4 = vld [vmem:[%s870_s1 + $0x70] sm:$0xff]   ;;  %v674_v8 = vld [vmem:[%s870_s1 + $0x68] sm:$0xff]  }
   0x2   :  { %v667_v1 = vld [vmem:[%s870_s1 + $0xf8] sm:$0xff]   ;;  %613 = vmatprep.subr.bf16.mxu0 %v666_v0  ;;  %v671_v5 = vld [vmem:[%s870_s1 + $0xf0] sm:$0xff]   ;;  %v675_v9 = vld [vmem:[%s870_s1 + $0xe8] sm:$0xff]  }
   0x3   :  { %v668_v2 = vld [vmem:[%s870_s1 + $0x38] sm:$0xff]   ;;  %635 = vmatprep.subr.bf16.mxu1 %v667_v1  ;;  %v672_v6 = vld [vmem:[%s870_s1 + $0x30] sm:$0xff]   ;;  %v676_v10 = vld [vmem:[%s870_s1 + $0x28] sm:$0xff]  }
   0x4   :  { %v669_v3 = vld [vmem:[%s870_s1 + $0xb8] sm:$0xff]   ;;  %614 = vmatpush3.bf16.msra.mxu0 %v668_v2  ;;  %v673_v7 = vld [vmem:[%s870_s1 + $0xb0] sm:$0xff]   ;;  %v677_v11 = vld [vmem:[%s870_s1 + $0xa8] sm:$0xff]  }
   0x5   :  { %636 = vmatpush3.bf16.msra.mxu1 %v669_v3  ;;  %615 = vmatprep.subr.bf16.mxu0 %v670_v4  ;;  %v678_v12 = vld [vmem:[%s870_s1 + $0x60] sm:$0xff]   ;;  %v682_v16 = vld [vmem:[%s870_s1 + $0x58] sm:$0xff]   ;;  %v686_v20 = vld [vmem:[%s870_s1 + $0x50] sm:$0xff]  }
   0x6   :  { %637 = vmatprep.subr.bf16.mxu1 %v671_v5  ;;  %v679_v13 = vld [vmem:[%s870_s1 + $0xe0] sm:$0xff]   ;;  %v683_v17 = vld [vmem:[%s870_s1 + $0xd8] sm:$0xff]   ;;  %v687_v21 = vld [vmem:[%s870_s1 + $0xd0] sm:$0xff]  }
   0x7   :  { %v680_v14 = vld [vmem:[%s870_s1 + $0x20] sm:$0xff]   ;;  %v684_v18 = vld [vmem:[%s870_s1 + $0x18] sm:$0xff]   ;;  %v688_v22 = vld [vmem:[%s870_s1 + $0x10] sm:$0xff]  }
   0x8   :  { %616 = vmatpush3.bf16.msra.mxu0 %v672_v6  ;;  %v681_v15 = vld [vmem:[%s870_s1 + $0xa0] sm:$0xff]   ;;  %v685_v19 = vld [vmem:[%s870_s1 + $0x98] sm:$0xff]   ;;  %v689_v23 = vld [vmem:[%s870_s1 + $0x90] sm:$0xff]  }
   0x9   :  { %638 = vmatpush3.bf16.msra.mxu1 %v673_v7  ;;  %617 = vmatprep.subr.bf16.mxu0 %v674_v8  ;;  %v690_v24 = vld [vmem:[%s870_s1 + $0x48] sm:$0xff]   ;;  %v694_v28 = vld [vmem:[%s870_s1 + $0x40] sm:$0xff]  }
   0xa   :  { %639 = vmatprep.subr.bf16.mxu1 %v675_v9  ;;  %v691_v25 = vld [vmem:[%s870_s1 + $0xc8] sm:$0xff]   ;;  %v695_v29 = vld [vmem:[%s870_s1 + $0xc0] sm:$0xff]  }
   0xb   :  { %v692_v26 = vld [vmem:[%s870_s1 + $0x8] sm:$0xff]   ;;  %v696_v30 = vld [vmem:[%s870_s1] sm:$0xff]  }
   0xc   :  { %618 = vmatpush3.bf16.msra.mxu0 %v676_v10  ;;  %v693_v27 = vld [vmem:[%s870_s1 + $0x88] sm:$0xff]   ;;  %v697_v31 = vld [vmem:[%s870_s1 + $0x80] sm:$0xff]  }
   0xd   :  { %640 = vmatpush3.bf16.msra.mxu1 %v677_v11  ;;  %619 = vmatprep.subr.bf16.mxu0 %v678_v12  ;;  %v698_v32 = vld [vmem:[%s869_s0] ss:$16 sps:$4 sm:$0xff]   ;;  %v700_v33 = vld [vmem:[%s869_s0 + $0x4] ss:$16 sps:$4 sm:$0xff]   ;;  %v701_v34 = vld [vmem:[%s869_s0 + $0x8] ss:$16 sps:$4 sm:$0xff]  }
   0xe   :  { %641 = vmatprep.subr.bf16.mxu1 %v679_v13  ;;  %v703_v35 = vld [vmem:[%s869_s0 + $0xc] ss:$16 sps:$4 sm:$0xff]  }
  0x10   :  { %620 = vmatpush3.bf16.msra.mxu0 %v680_v14 }
  0x11   :  { %642 = vmatpush3.bf16.msra.mxu1 %v681_v15  ;;  %621 = vmatprep.subr.bf16.mxu0 %v682_v16 }
  0x12   :  { %643 = vmatprep.subr.bf16.mxu1 %v683_v17 }
  0x14   :  { %622 = vmatpush3.bf16.msra.mxu0 %v684_v18 }
  0x15   :  { %644 = vmatpush3.bf16.msra.mxu1 %v685_v19  ;;  %623 = vmatprep.subr.bf16.mxu0 %v686_v20 }
  0x16   :  { %645 = vmatprep.subr.bf16.mxu1 %v687_v21 }
  0x18   :  { %624 = vmatpush3.bf16.msra.mxu0 %v688_v22 }
  0x19   :  { %646 = vmatpush3.bf16.msra.mxu1 %v689_v23  ;;  %625 = vmatprep.subr.bf16.mxu0 %v690_v24 }
  0x1a   :  { %647 = vmatprep.subr.bf16.mxu1 %v691_v25 }
  0x1c   :  { %626 = vmatpush3.bf16.msra.mxu0 %v692_v26 }
  0x1d   :  { %648 = vmatpush3.bf16.msra.mxu1 %v693_v27  ;;  %627 = vmatprep.subr.bf16.mxu0 %v694_v28 }
  0x1e   :  { %649 = vmatprep.subr.bf16.mxu1 %v695_v29 }
  0x20   :  { %628 = vmatpush3.bf16.msra.mxu0 %v696_v30 }
  0x21   :  { %650 = vmatpush3.bf16.msra.mxu1 %v697_v31 }
  0x22   :  { %7 = vsyncpa [#allocation4], 0  ;;  %334 = vmatprep.mubr.bf16.mxu0 %v700_v33  ;;  %375 = vmatprep.mubr.bf16.mxu1 %v703_v35  ;;  %vm17_vm0 = vcmask 523264   ;;  %v730_v36 = vmov 0.0   ;;  %vm396_vm1 = vcmask 1046528   ;;  %vm405_vm2 = vcmask 1040384  }
  0x23   :  { %335 = vmatmul.mubr.bf16.vlgmr.msra.gmra.mxu0 %v698_v32  ;;  %18 = vst.msk [vmem:[#allocation2] sm:$0xff] %vm17_vm0, %v730_v36  ;;  %19 = vst.msk [vmem:[#allocation2 + $0x8] sm:$0xff] %vm17_vm0, %v730_v36  ;;  %s731_s0 = smov 1   ;;  %s732_s1 = smov 127   ;;  %v414_v5 = vlaneseq  ;;  %vm449_vm3 = vcmask 7168   ;;  %vm437_vm4 = vcmask 515072  }
  0x24   :  { %376 = vmatmul.mubr.bf16.vlgmr.msra.gmra.mxu1 %v701_v34  ;;  %s733_s25 = smov 112   ;;  %s734_s26 = smov 96   ;;  %vm558_vm7 = vcmask 130048  }
  0x25   :  { %v415_v6 = vand.u32 127, %v414_v5  ;;  %s735_s27 = smov 80   ;;  %s736_s28 = smov [#allocation3]  }
  0x26   :  { %s566_s29 = sshll.u32 %s736_s28, 4  ;;  %s567_s29 = int_to_ptr.vmem [resolvable:$true] %s566_s29 }
  0x27   :  { %v420_v7 = vand.u32 15, %v415_v6  ;;  %s708_s30 = scalar_lea.vmem %s567_s29, 256  ;;  %p713_p1 = scmp.lt.s32.totalorder %s567_s29, %s567_s29 }
  0x28   :  { %p709_p0 = scmp.ne.s32.totalorder %s567_s29, %s708_s30  ;;  %p714_p2 = scmp.lt.s32.totalorder %s708_s30, %s708_s30 }
  0x29   :  { %vm428_vm5 = vcmp.lt.s32.totalorder %v420_v7, 15  ;;  %vm442_vm6 = vcmp.ge.s32.totalorder %v420_v7, 1 }
  0x2a   :  { %v20_v44 = vld [vmem:[#allocation2] sm:$0xff]  ;;  %v21_v52 = vld [vmem:[#allocation2 + $0x8] sm:$0xff]  ;;  %p715_p3 = por %p714_p2, %p713_p1 }
  0x2c   :  { %p716_p4 = pnand %p715_p3, %p709_p0 }
  0xe3   :  { %v629_v37 = vpop.f32.mrf.mxu0 }
  0xe4   :  { %v651_v38 = vpop.f32.mrf.mxu1 }
  0xe5   :  { %v630_v39 = vpop.f32.mrf.mxu0 }
  0xe6   :  { %v631_v40 = vadd.f32 %v630_v39, %v629_v37  ;;  %v652_v41 = vpop.f32.mrf.mxu1 }
  0xe7   :  { %v653_v42 = vadd.f32 %v652_v41, %v651_v38  ;;  %v632_v43 = vpop.f32.mrf.mxu0 }
  0xe8   :  { %v654_v45 = vpop.f32.mrf.mxu1 }
  0xe9   :  { %v378_v46 = vadd.f32 %v653_v42, %v631_v40  ;;  %v633_v47 = vpop.f32.mrf.mxu0 }
  0xea   :  { %v634_v48 = vadd.f32 %v633_v47, %v632_v43  ;;  %v655_v49 = vpop.f32.mrf.mxu1 }
  0xeb   :  { %v384_v50 = vadd.f32 %v378_v46, %v20_v44  ;;  %v656_v51 = vadd.f32 %v655_v49, %v654_v45 }
  0xed   :  { %387 = vst.msk [vmem:[#allocation2] sm:$0xff] %vm17_vm0, %v384_v50  ;;  %v381_v53 = vadd.f32 %v656_v51, %v634_v48 }
  0xef   :  { %v385_v54 = vadd.f32 %v381_v53, %v21_v52 }
  0xf1   :  { %388 = vst.msk [vmem:[#allocation2 + $0x8] sm:$0xff] %vm17_vm0, %v385_v54 }
  0xf4   :  { %v392_v55 = vld [vmem:[#allocation2] sm:$0xff] }
  0xf5   :  { %v397_v57 = vrot.slane %v392_v55, 1  ;;  %v406_v59 = vrot.slane %v392_v55, 7 }
  0xf7   :  { %v411_v63 = vsel %vm405_vm2, 0.0, %v406_v59 }
  0xf8   :  { %v393_v56 = vld [vmem:[#allocation2 + $0x8] sm:$0xff] }
  0xf9   :  { %v398_v58 = vrot.slane %v393_v56, 1  ;;  %v407_v0 = vrot.slane %v393_v56, 7 }
  0xfb   :  { %v399_v60 = vsel %vm396_vm1, %v397_v57, %v398_v58  ;;  %v402_v61 = vsel %vm396_vm1, %v398_v58, 0.0  ;;  %v408_v3 = vsel %vm405_vm2, %v406_v59, %v407_v0 }
  0xfc   :  { %v403_v62 = vadd.f32 %v399_v60, %v392_v55  ;;  %v404_v2 = vadd.f32 %v402_v61, %v393_v56 }
  0xfe   :  { %v412_v1 = vadd.f32 %v411_v63, %v403_v62  ;;  %v413_v4 = vadd.f32 %v408_v3, %v404_v2 }
 0x100   :  { %443 = vrot.lane.b32.xlu1 %v412_v1, %s731_s0  ;;  %431 = vrot.lane.b32.xlu0 %v412_v1, %s732_s1 }
 0x104   :  { %445 = vrot.lane.b32.xlu1 %v413_v4, %s731_s0  ;;  %433 = vrot.lane.b32.xlu0 %v413_v4, %s732_s1 }
 0x172   :  { %v444_v8 = vpop.permute.xlu1 %443  ;;  %v432_v9 = vpop.permute.xlu0 %431 }
 0x173   :  { %v450_v10 = vsel %vm449_vm3, 0.0, %v444_v8  ;;  %v438_v11 = vsel %vm437_vm4, %v432_v9, 0.0 }
 0x174   :  { %v440_v12 = vsel %vm428_vm5, %v438_v11, 0.0  ;;  %v452_v14 = vsel %vm442_vm6, %v450_v10, 0.0 }
 0x175   :  { %v454_v13 = vadd.f32 %v440_v12, %v412_v1 }
 0x176   :  { %v446_v15 = vpop.permute.xlu1 %445  ;;  %v434_v16 = vpop.permute.xlu0 %433 }
 0x177   :  { %v456_v17 = vadd.f32 %v454_v13, %v452_v14  ;;  %v451_v18 = vsel %vm449_vm3, 0.0, %v446_v15  ;;  %v439_v19 = vsel %vm437_vm4, %v434_v16, 0.0 }
 0x178   :  { %v441_v20 = vsel %vm428_vm5, %v439_v19, 0.0  ;;  %v453_v23 = vsel %vm442_vm6, %v451_v18, 0.0 }
 0x179   :  { %v455_v21 = vadd.f32 %v441_v20, %v413_v4  ;;  %v460_v22 = vmul.f32 0.25, %v456_v17 }
 0x17b   :  { %v457_v24 = vadd.f32 %v455_v21, %v453_v23  ;;  %v462_v25 = vfloor.f32 %v460_v22 }
 0x17d   :  { %v464_v26 = vsub.f32 %v460_v22, %v462_v25  ;;  %v461_v27 = vmul.f32 0.25, %v457_v24 }
 0x17f   :  { %v466_v28 = vmul.f32 2.0, %v464_v26  ;;  %v463_v29 = vfloor.f32 %v461_v27 }
 0x181   :  { %v468_v30 = vmin.f32 %v466_v28, 1.0  ;;  %v465_v31 = vsub.f32 %v461_v27, %v463_v29 }
 0x183   :  { %v470_v32 = vadd.f32 %v468_v30, %v462_v25  ;;  %v467_v33 = vmul.f32 2.0, %v465_v31 }
 0x185   :  { %486 = vrot.lane.b32.xlu0 %v470_v32, %s733_s25  ;;  %v469_v34 = vmin.f32 %v467_v33, 1.0 }
 0x187   :  { %v471_v35 = vadd.f32 %v469_v34, %v463_v29 }
 0x189   :  { %476 = vrot.lane.b32.xlu0 %v456_v17, %s733_s25  ;;  %488 = vrot.lane.b32.xlu1 %v471_v35, %s733_s25 }
 0x18d   :  { %508 = vrot.lane.b32.xlu0 %v456_v17, %s734_s26  ;;  %478 = vrot.lane.b32.xlu1 %v457_v24, %s733_s25 }
 0x191   :  { %516 = vrot.lane.b32.xlu0 %v456_v17, %s735_s27  ;;  %510 = vrot.lane.b32.xlu1 %v457_v24, %s734_s26 }
 0x195   :  { %518 = vrot.lane.b32.xlu1 %v457_v24, %s735_s27 }
 0x1f7   :  { %v487_v36 = vpop.permute.xlu0 %486 }
 0x1f8   :  { %v492_v37 = vadd.f32 %v487_v36, %v470_v32 }
 0x1fa   :  { %v494_v38 = vmul.f32 0.5, %v492_v37 }
 0x1fb   :  { %v489_v39 = vpop.permute.xlu1 %488  ;;  %v477_v52 = vpop.permute.xlu0 %476 }
 0x1fc   :  { %v496_v40 = vfloor.f32 %v494_v38  ;;  %v493_v41 = vadd.f32 %v489_v39, %v471_v35  ;;  %v482_v56 = vadd.f32 %v477_v52, %v456_v17 }
 0x1fe   :  { %v498_v42 = vsub.f32 %v494_v38, %v496_v40  ;;  %v495_v43 = vmul.f32 0.5, %v493_v41 }
 0x1ff   :  { %v479_v53 = vpop.permute.xlu1 %478  ;;  %v509_v54 = vpop.permute.xlu0 %508 }
 0x200   :  { %v500_v44 = vmul.f32 2.0, %v498_v42  ;;  %v497_v45 = vfloor.f32 %v495_v43  ;;  %v514_v58 = vadd.f32 %v509_v54, %v482_v56  ;;  %v483_v59 = vadd.f32 %v479_v53, %v457_v24 }
 0x202   :  { %v502_v46 = vmin.f32 %v500_v44, 1.0  ;;  %v499_v47 = vsub.f32 %v495_v43, %v497_v45 }
 0x203   :  { %v511_v55 = vpop.permute.xlu1 %510  ;;  %v517_v57 = vpop.permute.xlu0 %516 }
 0x204   :  { %v501_v48 = vmul.f32 2.0, %v499_v47  ;;  %v504_v49 = vadd.f32 %v502_v46, %v496_v40  ;;  %v522_v60 = vadd.f32 %v517_v57, %v514_v58  ;;  %v515_v62 = vadd.f32 %v511_v55, %v483_v59 }
 0x206   :  { %v503_v50 = vmin.f32 %v501_v48, 1.0  ;;  %526 = vrot.lane.b32.xlu0 %v504_v49, %s734_s26  ;;  %v546_v63 = vmax.f32 %v522_v60, 1e-06  ;;  %vm550_vm8 = vcmp.gt.f32.partialorder %v522_v60, 1e-06 }
 0x207   :  { %v519_v61 = vpop.permute.xlu1 %518 }
 0x208   :  { %v505_v51 = vadd.f32 %v503_v50, %v497_v45  ;;  %v523_v0 = vadd.f32 %v519_v61, %v515_v62  ;;  %704 = vrcp.f32 %v546_v63 }
 0x20a   :  { %528 = vrot.lane.b32.xlu1 %v505_v51, %s734_s26  ;;  %v547_v3 = vmax.f32 %v523_v0, 1e-06  ;;  %vm551_vm9 = vcmp.gt.f32.partialorder %v523_v0, 1e-06 }
 0x20c   :  { %706 = vrcp.f32 %v547_v3 }
 0x215   :  { %v705_v18 = vpop.eup %704 }
 0x219   :  { %v707_v23 = vpop.eup %706 }
 0x278   :  { %v527_v1 = vpop.permute.xlu0 %526 }
 0x279   :  { %v532_v2 = vadd.f32 %v527_v1, %v504_v49 }
 0x27b   :  { %v534_v4 = vmul.f32 0.5, %v532_v2 }
 0x27c   :  { %v529_v5 = vpop.permute.xlu1 %528 }
 0x27d   :  { %v536_v6 = vfloor.f32 %v534_v4  ;;  %v533_v7 = vadd.f32 %v529_v5, %v505_v51 }
 0x27f   :  { %v538_v8 = vsub.f32 %v534_v4, %v536_v6  ;;  %v535_v9 = vmul.f32 0.5, %v533_v7 }
 0x281   :  { %v540_v10 = vmul.f32 2.0, %v538_v8  ;;  %v537_v11 = vfloor.f32 %v535_v9 }
 0x283   :  { %v542_v12 = vmin.f32 %v540_v10, 1.0  ;;  %v539_v13 = vsub.f32 %v535_v9, %v537_v11 }
 0x285   :  { %v544_v14 = vadd.f32 %v542_v12, %v536_v6  ;;  %v541_v15 = vmul.f32 2.0, %v539_v13 }
 0x287   :  { %v552_v16 = vmul.f32 16.0, %v544_v14  ;;  %v543_v17 = vmin.f32 %v541_v15, 1.0 }
 0x289   :  { %v554_v19 = vmul.f32 %v705_v18, %v552_v16  ;;  %v545_v20 = vadd.f32 %v543_v17, %v537_v11 }
 0x28b   :  { %v553_v21 = vmul.f32 16.0, %v545_v20  ;;  %v556_v22 = vsel %vm550_vm8, %v554_v19, 0.0 }
 0x28c   :  { %559 = vst.msk [vmem:[#allocation3] sm:$0xff] %vm558_vm7, %v556_v22 }
 0x28d   :  { %v555_v24 = vmul.f32 %v707_v23, %v553_v21 }
 0x28f   :  { %v557_v25 = vsel %vm551_vm9, %v555_v24, 0.0 }
 0x290   :  { %560 = vst.msk [vmem:[#allocation3 + $0x8] sm:$0xff] %vm558_vm7, %v557_v25 }
 0x291   :  { %719 = shalt.err (!%p716_p4)
}
 0x292   :  { %s737_s3 = smov 128   ;;  %s738_s4 = smov 8  }
 0x293   :  { %572 = dma.vmem_to_hbm [thread:$0]  %s567_s29, 256, %s871_s2, [#allocation4], %s737_s3, %s737_s3, %s738_s4  }
 0x294   :  { %728 = dma.done.wait [#allocation4], 256  }
 0x295   :  { %729 = vsyncadd [#allocation4], 4294967040 }
 0x296   :  { %576 = vsyncpa [#allocation4], 1 }

</bundles_post_ra>
